<compile_context>
chip_gen: v6e
topology: v6e:2x2x1
jax: 0.10.0
libtpu: 0.0.40
codegen_flags: <defaults>
</compile_context>

<pallas_src>
import numpy as np
import jax
import jax.numpy as jnp
from jax.experimental import pallas as pl
from jax.experimental.pallas import tpu as pltpu


def _round_up(n, m):
    return ((n + m - 1) // m) * m


def _make_kernel(W, HW, Cin, Chid, Cxp, Chp):
    h_base = 9 * Cxp

    def kernel(x_ref, h_ref, c_ref, w_ref, b_ref, m_ref, ch_ref, cc_ref, col_ref):
        # The channel-padding rows of the im2col scratch multiply zero weight
        # columns, but uninitialized VMEM could hold NaN/Inf -> zero them.
        # A full-scratch zero is a cheap VMEM splat-store and is unconditional
        # so it is correct for every grid step / core.
        col_ref[...] = jnp.zeros_like(col_ref)

        x = x_ref[0]                                   # (Cin,  HW) f32
        h = h_ref[0]                                   # (Chid, HW) f32

        # im2col: tap (dy, dx) == lane roll by dy*W+dx of the flattened image,
        # masked at the image border; stacked on sublanes (channel axis).
        for t in range(9):
            dy, dx = t // 3 - 1, t % 3 - 1
            shift = (-(dy * W + dx)) % HW              # static python int
            xs = x if shift == 0 else pltpu.roll(x, shift=shift, axis=1)
            hs = h if shift == 0 else pltpu.roll(h, shift=shift, axis=1)
            m = m_ref[t:t + 1, :]                      # (1, HW) 0/1 border mask
            col_ref[t * Cxp:t * Cxp + Cin, :] = xs * m
            col_ref[h_base + t * Chp:h_base + t * Chp + Chid, :] = hs * m

        # Single fused MXU matmul: all 9 taps, x- and h-convolutions, 4 gates.
        col = col_ref[...].astype(jnp.bfloat16)
        acc = jnp.dot(w_ref[...], col, preferred_element_type=jnp.float32)  # (G, HW)
        acc = acc + b_ref[...]                         # bias (G,1), lane broadcast

        # Gates packed [f, i, o, c]: one sigmoid slab + one tanh slab.
        sig = jax.nn.sigmoid(acc[0:3 * Chid, :])
        f = sig[0:Chid, :]
        i = sig[Chid:2 * Chid, :]
        o = sig[2 * Chid:3 * Chid, :]
        g = jnp.tanh(acc[3 * Chid:4 * Chid, :])

        c_prev = c_ref[0]                              # (Chid, HW) f32
        cc = f * c_prev + i * g
        ch = o * jnp.tanh(cc)
        cc_ref[0] = cc
        ch_ref[0] = ch

    return kernel


def _pack_params(params, Cin, Chid, Cxp, Chp):
    """Pack the 8 conv weights into one (4*Chid, 9*(Cxp+Chp)) bf16 matrix whose
    columns line up with the in-kernel im2col scratch, plus the (G,1) bias."""
    G = 4 * Chid

    def pack(names, Ci, Cp):
        ws = jnp.concatenate([params[n] for n in names], axis=0)   # (G, Ci, 3, 3)
        w = jnp.transpose(ws, (2, 3, 1, 0)).reshape(9, Ci, G)      # [tap, cin, gate]
        w = jnp.pad(w, ((0, 0), (0, Cp - Ci), (0, 0)))             # pad cin -> Cp
        return jnp.transpose(w, (2, 0, 1)).reshape(G, 9 * Cp)      # [gate, tap*Cp+cin]

    wx = pack(['Wxf', 'Wxi', 'Wxo', 'Wxc'], Cin, Cxp)              # (G, 9*Cxp)
    wh = pack(['Whf', 'Whi', 'Who', 'Whc'], Chid, Chp)             # (G, 9*Chp)
    w = jnp.concatenate([wx, wh], axis=1).astype(jnp.bfloat16)     # (G, Ktot)
    b = jnp.concatenate([params['bxf'], params['bxi'],
                         params['bxo'], params['bxc']])[:, None]   # (G, 1) f32
    return w, b.astype(jnp.float32)


def _border_masks(H, W):
    """(9, H*W) 0/1 float masks: mask[t, y*W+x] == 1 iff (y+dy, x+dx) is inside
    the image for tap t = (dy+1)*3 + (dx+1)."""
    yy, xx = np.meshgrid(np.arange(H), np.arange(W), indexing='ij')
    m = np.zeros((9, H * W), np.float32)
    for t in range(9):
        dy, dx = t // 3 - 1, t % 3 - 1
        ok = (yy + dy >= 0) & (yy + dy < H) & (xx + dx >= 0) & (xx + dx < W)
        m[t] = ok.reshape(-1).astype(np.float32)
    return jnp.asarray(m)


@jax.jit
def conv_lstm_cell(x, h, c, params):
    """x: (B, Cin, H, W); h, c: (B, Chid, H, W) (NCHW, as in PyTorch).
    Returns (ch, cc), both (B, Chid, H, W) float32."""
    B, Cin, H, W = x.shape
    Chid = h.shape[1]
    HW = H * W
    Cxp = _round_up(Cin, 8)        # sublane-aligned channel slots per tap (x)
    Chp = _round_up(Chid, 8)       # sublane-aligned channel slots per tap (h)
    Ktot = 9 * (Cxp + Chp)
    G = 4 * Chid

    # NCHW with flattened spatial axis: channels on sublanes, H*W on lanes.
    x_f = x.reshape(B, Cin, HW)
    h_f = h.reshape(B, Chid, HW)
    c_f = c.reshape(B, Chid, HW)

    w, b = _pack_params(params, Cin, Chid, Cxp, Chp)
    masks = _border_masks(H, W)
    kernel = _make_kernel(W, HW, Cin, Chid, Cxp, Chp)

    ch_f, cc_f = pl.pallas_call(
        kernel,
        out_shape=(jax.ShapeDtypeStruct((B, Chid, HW), jnp.float32),
                   jax.ShapeDtypeStruct((B, Chid, HW), jnp.float32)),
        grid_spec=pltpu.PrefetchScalarGridSpec(
            num_scalar_prefetch=0,
            grid=(B,),
            in_specs=[
                pl.BlockSpec((1, Cin, HW), lambda bi: (bi, 0, 0)),   # x
                pl.BlockSpec((1, Chid, HW), lambda bi: (bi, 0, 0)),  # h
                pl.BlockSpec((1, Chid, HW), lambda bi: (bi, 0, 0)),  # c
                pl.BlockSpec((G, Ktot), lambda bi: (0, 0)),          # packed W (bf16)
                pl.BlockSpec((G, 1), lambda bi: (0, 0)),             # bias
                pl.BlockSpec((9, HW), lambda bi: (0, 0)),            # border masks
            ],
            out_specs=[
                pl.BlockSpec((1, Chid, HW), lambda bi: (bi, 0, 0)),  # ch (lane-dense)
                pl.BlockSpec((1, Chid, HW), lambda bi: (bi, 0, 0)),  # cc (lane-dense)
            ],
            scratch_shapes=[pltpu.VMEM((Ktot, HW), jnp.float32)],    # im2col scratch
        ),
        compiler_params=pltpu.CompilerParams(
            dimension_semantics=("parallel",)),
    )(x_f, h_f, c_f, w, b, masks)

    return ch_f.reshape(B, Chid, H, W), cc_f.reshape(B, Chid, H, W)


def init_params(key, input_channels=21, hidden_channels=1, kernel_size=3):
    # Matches the PyTorch init: Conv2d weights ~ N(0, 0.01), biases zero,
    # Wh* convs have no bias (only the 4 x-conv biases exist and are zero).
    keys = jax.random.split(key, 8)
    p = {}
    for i, n in enumerate(['Wxf', 'Wxi', 'Wxc', 'Wxo']):
        p[n] = 0.01 * jax.random.normal(
            keys[i], (hidden_channels, input_channels, kernel_size, kernel_size),
            jnp.float32)
        p['b' + n[1:]] = jnp.zeros((hidden_channels,), jnp.float32)
    for i, n in enumerate(['Whf', 'Whi', 'Whc', 'Who']):
        p[n] = 0.01 * jax.random.normal(
            keys[4 + i], (hidden_channels, hidden_channels, kernel_size, kernel_size),
            jnp.float32)
    return p


# ---------------- pure-JAX reference (for correctness check) -----------------
def _conv2d_ref(x_nchw, w_oihw, b=None):
    out = jax.lax.conv_general_dilated(
        x_nchw, w_oihw, window_strides=(1, 1), padding='SAME',
        dimension_numbers=('NCHW', 'OIHW', 'NCHW'))
    if b is not None:
        out = out + b[None, :, None, None]
    return out


def reference_forward(x, h, c, p):
    cf = jax.nn.sigmoid(_conv2d_ref(x, p['Wxf'], p['bxf']) + _conv2d_ref(h, p['Whf']))
    ci = jax.nn.sigmoid(_conv2d_ref(x, p['Wxi'], p['bxi']) + _conv2d_ref(h, p['Whi']))
    cc = cf * c + ci * jnp.tanh(_conv2d_ref(x, p['Wxc'], p['bxc']) + _conv2d_ref(h, p['Whc']))
    co = jax.nn.sigmoid(_conv2d_ref(x, p['Wxo'], p['bxo']) + _conv2d_ref(h, p['Who']))
    ch = co * jnp.tanh(cc)
    return ch, cc


if __name__ == "__main__":
    key = jax.random.PRNGKey(0)
    B, Cin, Chid, H, W = 2, 21, 1, 16, 16

    kx, kh, kc, kp = jax.random.split(key, 4)
    x = jax.random.normal(kx, (B, Cin, H, W), jnp.float32)
    h = jax.random.normal(kh, (B, Chid, H, W), jnp.float32)
    c = jax.random.normal(kc, (B, Chid, H, W), jnp.float32)
    params = init_params(kp, Cin, Chid, 3)

    ch, cc = conv_lstm_cell(x, h, c, params)
    jax.block_until_ready((ch, cc))

    ch_ref, cc_ref = reference_forward(x, h, c, params)
    # bf16 matmul operands (f32 accumulation) -> slightly looser tolerances.
    np.testing.assert_allclose(np.asarray(ch), np.asarray(ch_ref), atol=5e-3, rtol=2e-2)
    np.testing.assert_allclose(np.asarray(cc), np.asarray(cc_ref), atol=5e-3, rtol=2e-2)

    print("KERNEL_OK")
</pallas_src>

<mosaic_0001>
module attributes {stable_mosaic.version = 11 : i64} {
  func.func @kernel(%arg0: i32, %arg1: memref<1x21x256xf32, #tpu.memory_space<vmem>>, %arg2: memref<1x1x256xf32, #tpu.memory_space<vmem>>, %arg3: memref<1x1x256xf32, #tpu.memory_space<vmem>>, %arg4: memref<4x288xbf16, #tpu.memory_space<vmem>>, %arg5: memref<4x1xf32, #tpu.memory_space<vmem>>, %arg6: memref<9x256xf32, #tpu.memory_space<vmem>>, %arg7: memref<1x1x256xf32, #tpu.memory_space<vmem>>, %arg8: memref<1x1x256xf32, #tpu.memory_space<vmem>>, %arg9: memref<288x256xf32, #tpu.memory_space<vmem>>) attributes {dimension_semantics = [#tpu.dimension_semantics<parallel>], iteration_bounds = array<i64: 2>, scalar_prefetch = 0 : i64, scratch_operands = 1 : i64, tpu.core_type = #tpu.core_type<tc>, window_params = [{transform_indices = @transform_0, window_bounds = array<i64: 1, 21, 256>}, {transform_indices = @transform_1, window_bounds = array<i64: 1, 1, 256>}, {transform_indices = @transform_2, window_bounds = array<i64: 1, 1, 256>}, {pipeline_mode = #tpu.pipeline_mode<synchronous>, transform_indices = @transform_3, window_bounds = array<i64: 4, 288>}, {pipeline_mode = #tpu.pipeline_mode<synchronous>, transform_indices = @transform_4, window_bounds = array<i64: 4, 1>}, {pipeline_mode = #tpu.pipeline_mode<synchronous>, transform_indices = @transform_5, window_bounds = array<i64: 9, 256>}, {transform_indices = @transform_6, window_bounds = array<i64: 1, 1, 256>}, {transform_indices = @transform_7, window_bounds = array<i64: 1, 1, 256>}]} {
    %cst = arith.constant 0.000000e+00 : f32
    %0 = vector.broadcast %cst : f32 to vector<288x256xf32>
    %c0 = arith.constant 0 : index
    %c0_0 = arith.constant 0 : index
    %1 = vector.load %arg9[%c0, %c0_0] : memref<288x256xf32, #tpu.memory_space<vmem>>, vector<288x256xf32>
    tpu.vector_store %arg9[%c0, %c0_0], %0 {strides = array<i32>} : memref<288x256xf32, #tpu.memory_space<vmem>>, vector<288x256xf32>,
    %c0_1 = arith.constant 0 : index
    %c0_2 = arith.constant 0 : index
    %c0_3 = arith.constant 0 : index
    %2 = vector.load %arg1[%c0_1, %c0_2, %c0_3] : memref<1x21x256xf32, #tpu.memory_space<vmem>>, vector<1x21x256xf32>
    %3 = vector.shape_cast %2 : vector<1x21x256xf32> to vector<21x256xf32>
    %c0_4 = arith.constant 0 : index
    %c0_5 = arith.constant 0 : index
    %c0_6 = arith.constant 0 : index
    %4 = vector.load %arg2[%c0_4, %c0_5, %c0_6] : memref<1x1x256xf32, #tpu.memory_space<vmem>>, vector<1x1x256xf32>
    %5 = vector.shape_cast %4 : vector<1x1x256xf32> to vector<1x256xf32>
    %c17_i32 = arith.constant 17 : i32
    %6 = tpu.dynamic_rotate %3 by %c17_i32 dim 1 : vector<21x256xf32>, i32 -> vector<21x256xf32>
    %c17_i32_7 = arith.constant 17 : i32
    %7 = tpu.dynamic_rotate %5 by %c17_i32_7 dim 1 : vector<1x256xf32>, i32 -> vector<1x256xf32>
    %c0_8 = arith.constant 0 : index
    %c0_9 = arith.constant 0 : index
    %8 = vector.load %arg6[%c0_8, %c0_9] : memref<9x256xf32, #tpu.memory_space<vmem>>, vector<1x256xf32>
    %9 = vector.broadcast %8 : vector<1x256xf32> to vector<21x256xf32>
    %10 = arith.mulf %6, %9 : vector<21x256xf32>
    %c0_10 = arith.constant 0 : index
    %c0_11 = arith.constant 0 : index
    %11 = vector.load %arg9[%c0_10, %c0_11] : memref<288x256xf32, #tpu.memory_space<vmem>>, vector<21x256xf32>
    tpu.vector_store %arg9[%c0_10, %c0_11], %10 {strides = array<i32>} : memref<288x256xf32, #tpu.memory_space<vmem>>, vector<21x256xf32>,
    %12 = arith.mulf %7, %8 : vector<1x256xf32>
    %c216 = arith.constant 216 : index
    %c0_12 = arith.constant 0 : index
    %13 = vector.load %arg9[%c216, %c0_12] : memref<288x256xf32, #tpu.memory_space<vmem>>, vector<1x256xf32>
    tpu.vector_store %arg9[%c216, %c0_12], %12 {strides = array<i32>} : memref<288x256xf32, #tpu.memory_space<vmem>>, vector<1x256xf32>,
    %c16_i32 = arith.constant 16 : i32
    %14 = tpu.dynamic_rotate %3 by %c16_i32 dim 1 : vector<21x256xf32>, i32 -> vector<21x256xf32>
    %c16_i32_13 = arith.constant 16 : i32
    %15 = tpu.dynamic_rotate %5 by %c16_i32_13 dim 1 : vector<1x256xf32>, i32 -> vector<1x256xf32>
    %c1 = arith.constant 1 : index
    %c0_14 = arith.constant 0 : index
    %16 = vector.load %arg6[%c1, %c0_14] : memref<9x256xf32, #tpu.memory_space<vmem>>, vector<1x256xf32>
    %17 = vector.broadcast %16 : vector<1x256xf32> to vector<21x256xf32>
    %18 = arith.mulf %14, %17 : vector<21x256xf32>
    %c24 = arith.constant 24 : index
    %c0_15 = arith.constant 0 : index
    %19 = vector.load %arg9[%c24, %c0_15] : memref<288x256xf32, #tpu.memory_space<vmem>>, vector<21x256xf32>
    tpu.vector_store %arg9[%c24, %c0_15], %18 {strides = array<i32>} : memref<288x256xf32, #tpu.memory_space<vmem>>, vector<21x256xf32>,
    %20 = arith.mulf %15, %16 : vector<1x256xf32>
    %c224 = arith.constant 224 : index
    %c0_16 = arith.constant 0 : index
    %21 = vector.load %arg9[%c224, %c0_16] : memref<288x256xf32, #tpu.memory_space<vmem>>, vector<1x256xf32>
    tpu.vector_store %arg9[%c224, %c0_16], %20 {strides = array<i32>} : memref<288x256xf32, #tpu.memory_space<vmem>>, vector<1x256xf32>,
    %c15_i32 = arith.constant 15 : i32
    %22 = tpu.dynamic_rotate %3 by %c15_i32 dim 1 : vector<21x256xf32>, i32 -> vector<21x256xf32>
    %c15_i32_17 = arith.constant 15 : i32
    %23 = tpu.dynamic_rotate %5 by %c15_i32_17 dim 1 : vector<1x256xf32>, i32 -> vector<1x256xf32>
    %c2 = arith.constant 2 : index
    %c0_18 = arith.constant 0 : index
    %24 = vector.load %arg6[%c2, %c0_18] : memref<9x256xf32, #tpu.memory_space<vmem>>, vector<1x256xf32>
    %25 = vector.broadcast %24 : vector<1x256xf32> to vector<21x256xf32>
    %26 = arith.mulf %22, %25 : vector<21x256xf32>
    %c48 = arith.constant 48 : index
    %c0_19 = arith.constant 0 : index
    %27 = vector.load %arg9[%c48, %c0_19] : memref<288x256xf32, #tpu.memory_space<vmem>>, vector<21x256xf32>
    tpu.vector_store %arg9[%c48, %c0_19], %26 {strides = array<i32>} : memref<288x256xf32, #tpu.memory_space<vmem>>, vector<21x256xf32>,
    %28 = arith.mulf %23, %24 : vector<1x256xf32>
    %c232 = arith.constant 232 : index
    %c0_20 = arith.constant 0 : index
    %29 = vector.load %arg9[%c232, %c0_20] : memref<288x256xf32, #tpu.memory_space<vmem>>, vector<1x256xf32>
    tpu.vector_store %arg9[%c232, %c0_20], %28 {strides = array<i32>} : memref<288x256xf32, #tpu.memory_space<vmem>>, vector<1x256xf32>,
    %c1_i32 = arith.constant 1 : i32
    %30 = tpu.dynamic_rotate %3 by %c1_i32 dim 1 : vector<21x256xf32>, i32 -> vector<21x256xf32>
    %c1_i32_21 = arith.constant 1 : i32
    %31 = tpu.dynamic_rotate %5 by %c1_i32_21 dim 1 : vector<1x256xf32>, i32 -> vector<1x256xf32>
    %c3 = arith.constant 3 : index
    %c0_22 = arith.constant 0 : index
    %32 = vector.load %arg6[%c3, %c0_22] : memref<9x256xf32, #tpu.memory_space<vmem>>, vector<1x256xf32>
    %33 = vector.broadcast %32 : vector<1x256xf32> to vector<21x256xf32>
    %34 = arith.mulf %30, %33 : vector<21x256xf32>
    %c72 = arith.constant 72 : index
    %c0_23 = arith.constant 0 : index
    %35 = vector.load %arg9[%c72, %c0_23] : memref<288x256xf32, #tpu.memory_space<vmem>>, vector<21x256xf32>
    tpu.vector_store %arg9[%c72, %c0_23], %34 {strides = array<i32>} : memref<288x256xf32, #tpu.memory_space<vmem>>, vector<21x256xf32>,
    %36 = arith.mulf %31, %32 : vector<1x256xf32>
    %c240 = arith.constant 240 : index
    %c0_24 = arith.constant 0 : index
    %37 = vector.load %arg9[%c240, %c0_24] : memref<288x256xf32, #tpu.memory_space<vmem>>, vector<1x256xf32>
    tpu.vector_store %arg9[%c240, %c0_24], %36 {strides = array<i32>} : memref<288x256xf32, #tpu.memory_space<vmem>>, vector<1x256xf32>,
    %c4 = arith.constant 4 : index
    %c0_25 = arith.constant 0 : index
    %38 = vector.load %arg6[%c4, %c0_25] : memref<9x256xf32, #tpu.memory_space<vmem>>, vector<1x256xf32>
    %39 = vector.broadcast %38 : vector<1x256xf32> to vector<21x256xf32>
    %40 = arith.mulf %3, %39 : vector<21x256xf32>
    %c96 = arith.constant 96 : index
    %c0_26 = arith.constant 0 : index
    %41 = vector.load %arg9[%c96, %c0_26] : memref<288x256xf32, #tpu.memory_space<vmem>>, vector<21x256xf32>
    tpu.vector_store %arg9[%c96, %c0_26], %40 {strides = array<i32>} : memref<288x256xf32, #tpu.memory_space<vmem>>, vector<21x256xf32>,
    %42 = arith.mulf %5, %38 : vector<1x256xf32>
    %c248 = arith.constant 248 : index
    %c0_27 = arith.constant 0 : index
    %43 = vector.load %arg9[%c248, %c0_27] : memref<288x256xf32, #tpu.memory_space<vmem>>, vector<1x256xf32>
    tpu.vector_store %arg9[%c248, %c0_27], %42 {strides = array<i32>} : memref<288x256xf32, #tpu.memory_space<vmem>>, vector<1x256xf32>,
    %c255_i32 = arith.constant 255 : i32
    %44 = tpu.dynamic_rotate %3 by %c255_i32 dim 1 : vector<21x256xf32>, i32 -> vector<21x256xf32>
    %c255_i32_28 = arith.constant 255 : i32
    %45 = tpu.dynamic_rotate %5 by %c255_i32_28 dim 1 : vector<1x256xf32>, i32 -> vector<1x256xf32>
    %c5 = arith.constant 5 : index
    %c0_29 = arith.constant 0 : index
    %46 = vector.load %arg6[%c5, %c0_29] : memref<9x256xf32, #tpu.memory_space<vmem>>, vector<1x256xf32>
    %47 = vector.broadcast %46 : vector<1x256xf32> to vector<21x256xf32>
    %48 = arith.mulf %44, %47 : vector<21x256xf32>
    %c120 = arith.constant 120 : index
    %c0_30 = arith.constant 0 : index
    %49 = vector.load %arg9[%c120, %c0_30] : memref<288x256xf32, #tpu.memory_space<vmem>>, vector<21x256xf32>
    tpu.vector_store %arg9[%c120, %c0_30], %48 {strides = array<i32>} : memref<288x256xf32, #tpu.memory_space<vmem>>, vector<21x256xf32>,
    %50 = arith.mulf %45, %46 : vector<1x256xf32>
    %c256 = arith.constant 256 : index
    %c0_31 = arith.constant 0 : index
    %51 = vector.load %arg9[%c256, %c0_31] : memref<288x256xf32, #tpu.memory_space<vmem>>, vector<1x256xf32>
    tpu.vector_store %arg9[%c256, %c0_31], %50 {strides = array<i32>} : memref<288x256xf32, #tpu.memory_space<vmem>>, vector<1x256xf32>,
    %c241_i32 = arith.constant 241 : i32
    %52 = tpu.dynamic_rotate %3 by %c241_i32 dim 1 : vector<21x256xf32>, i32 -> vector<21x256xf32>
    %c241_i32_32 = arith.constant 241 : i32
    %53 = tpu.dynamic_rotate %5 by %c241_i32_32 dim 1 : vector<1x256xf32>, i32 -> vector<1x256xf32>
    %c6 = arith.constant 6 : index
    %c0_33 = arith.constant 0 : index
    %54 = vector.load %arg6[%c6, %c0_33] : memref<9x256xf32, #tpu.memory_space<vmem>>, vector<1x256xf32>
    %55 = vector.broadcast %54 : vector<1x256xf32> to vector<21x256xf32>
    %56 = arith.mulf %52, %55 : vector<21x256xf32>
    %c144 = arith.constant 144 : index
    %c0_34 = arith.constant 0 : index
    %57 = vector.load %arg9[%c144, %c0_34] : memref<288x256xf32, #tpu.memory_space<vmem>>, vector<21x256xf32>
    tpu.vector_store %arg9[%c144, %c0_34], %56 {strides = array<i32>} : memref<288x256xf32, #tpu.memory_space<vmem>>, vector<21x256xf32>,
    %58 = arith.mulf %53, %54 : vector<1x256xf32>
    %c264 = arith.constant 264 : index
    %c0_35 = arith.constant 0 : index
    %59 = vector.load %arg9[%c264, %c0_35] : memref<288x256xf32, #tpu.memory_space<vmem>>, vector<1x256xf32>
    tpu.vector_store %arg9[%c264, %c0_35], %58 {strides = array<i32>} : memref<288x256xf32, #tpu.memory_space<vmem>>, vector<1x256xf32>,
    %c240_i32 = arith.constant 240 : i32
    %60 = tpu.dynamic_rotate %3 by %c240_i32 dim 1 : vector<21x256xf32>, i32 -> vector<21x256xf32>
    %c240_i32_36 = arith.constant 240 : i32
    %61 = tpu.dynamic_rotate %5 by %c240_i32_36 dim 1 : vector<1x256xf32>, i32 -> vector<1x256xf32>
    %c7 = arith.constant 7 : index
    %c0_37 = arith.constant 0 : index
    %62 = vector.load %arg6[%c7, %c0_37] : memref<9x256xf32, #tpu.memory_space<vmem>>, vector<1x256xf32>
    %63 = vector.broadcast %62 : vector<1x256xf32> to vector<21x256xf32>
    %64 = arith.mulf %60, %63 : vector<21x256xf32>
    %c168 = arith.constant 168 : index
    %c0_38 = arith.constant 0 : index
    %65 = vector.load %arg9[%c168, %c0_38] : memref<288x256xf32, #tpu.memory_space<vmem>>, vector<21x256xf32>
    tpu.vector_store %arg9[%c168, %c0_38], %64 {strides = array<i32>} : memref<288x256xf32, #tpu.memory_space<vmem>>, vector<21x256xf32>,
    %66 = arith.mulf %61, %62 : vector<1x256xf32>
    %c272 = arith.constant 272 : index
    %c0_39 = arith.constant 0 : index
    %67 = vector.load %arg9[%c272, %c0_39] : memref<288x256xf32, #tpu.memory_space<vmem>>, vector<1x256xf32>
    tpu.vector_store %arg9[%c272, %c0_39], %66 {strides = array<i32>} : memref<288x256xf32, #tpu.memory_space<vmem>>, vector<1x256xf32>,
    %c239_i32 = arith.constant 239 : i32
    %68 = tpu.dynamic_rotate %3 by %c239_i32 dim 1 : vector<21x256xf32>, i32 -> vector<21x256xf32>
    %c239_i32_40 = arith.constant 239 : i32
    %69 = tpu.dynamic_rotate %5 by %c239_i32_40 dim 1 : vector<1x256xf32>, i32 -> vector<1x256xf32>
    %c8 = arith.constant 8 : index
    %c0_41 = arith.constant 0 : index
    %70 = vector.load %arg6[%c8, %c0_41] : memref<9x256xf32, #tpu.memory_space<vmem>>, vector<1x256xf32>
    %71 = vector.broadcast %70 : vector<1x256xf32> to vector<21x256xf32>
    %72 = arith.mulf %68, %71 : vector<21x256xf32>
    %c192 = arith.constant 192 : index
    %c0_42 = arith.constant 0 : index
    %73 = vector.load %arg9[%c192, %c0_42] : memref<288x256xf32, #tpu.memory_space<vmem>>, vector<21x256xf32>
    tpu.vector_store %arg9[%c192, %c0_42], %72 {strides = array<i32>} : memref<288x256xf32, #tpu.memory_space<vmem>>, vector<21x256xf32>,
    %74 = arith.mulf %69, %70 : vector<1x256xf32>
    %c280 = arith.constant 280 : index
    %c0_43 = arith.constant 0 : index
    %75 = vector.load %arg9[%c280, %c0_43] : memref<288x256xf32, #tpu.memory_space<vmem>>, vector<1x256xf32>
    tpu.vector_store %arg9[%c280, %c0_43], %74 {strides = array<i32>} : memref<288x256xf32, #tpu.memory_space<vmem>>, vector<1x256xf32>,
    %c0_44 = arith.constant 0 : index
    %c0_45 = arith.constant 0 : index
    %76 = vector.load %arg9[%c0_44, %c0_45] : memref<288x256xf32, #tpu.memory_space<vmem>>, vector<288x256xf32>
    %77 = arith.truncf %76 : vector<288x256xf32> to vector<288x256xbf16>
    %c0_46 = arith.constant 0 : index
    %c0_47 = arith.constant 0 : index
    %78 = vector.load %arg4[%c0_46, %c0_47] : memref<4x288xbf16, #tpu.memory_space<vmem>>, vector<4x288xbf16>
    %cst_48 = arith.constant dense<0.000000e+00> : vector<4x256xf32>
    %79 = tpu.matmul %78, %77, %cst_48 {dimension_numbers = #tpu.dot_dimension_numbers<[1], [0], [0], [1], [0, 0, 1, 1], [], []>} : vector<4x288xbf16>, vector<288x256xbf16>, vector<4x256xf32> -> vector<4x256xf32>
    %c0_49 = arith.constant 0 : index
    %c0_50 = arith.constant 0 : index
    %80 = vector.load %arg5[%c0_49, %c0_50] : memref<4x1xf32, #tpu.memory_space<vmem>>, vector<4x1xf32>
    %81 = vector.broadcast %80 : vector<4x1xf32> to vector<4x256xf32>
    %82 = arith.addf %79, %81 : vector<4x256xf32>
    %83 = vector.extract_strided_slice %82 {offsets = [0, 0], sizes = [3, 256], strides = [1, 1]} : vector<4x256xf32> to vector<3x256xf32>
    %84 = arith.negf %83 : vector<3x256xf32>
    %85 = math.exp %84 : vector<3x256xf32>
    %cst_51 = arith.constant 1.000000e+00 : f32
    %86 = vector.broadcast %cst_51 : f32 to vector<3x256xf32>
    %87 = arith.addf %86, %85 : vector<3x256xf32>
    %88 = arith.divf %86, %87 : vector<3x256xf32>
    %89 = vector.extract_strided_slice %88 {offsets = [0, 0], sizes = [1, 256], strides = [1, 1]} : vector<3x256xf32> to vector<1x256xf32>
    %90 = vector.extract_strided_slice %88 {offsets = [1, 0], sizes = [1, 256], strides = [1, 1]} : vector<3x256xf32> to vector<1x256xf32>
    %91 = vector.extract_strided_slice %88 {offsets = [2, 0], sizes = [1, 256], strides = [1, 1]} : vector<3x256xf32> to vector<1x256xf32>
    %92 = vector.extract_strided_slice %82 {offsets = [3, 0], sizes = [1, 256], strides = [1, 1]} : vector<4x256xf32> to vector<1x256xf32>
    %93 = math.tanh %92 : vector<1x256xf32>
    %c0_52 = arith.constant 0 : index
    %c0_53 = arith.constant 0 : index
    %c0_54 = arith.constant 0 : index
    %94 = vector.load %arg3[%c0_52, %c0_53, %c0_54] : memref<1x1x256xf32, #tpu.memory_space<vmem>>, vector<1x1x256xf32>
    %95 = vector.shape_cast %94 : vector<1x1x256xf32> to vector<1x256xf32>
    %96 = arith.mulf %89, %95 : vector<1x256xf32>
    %97 = arith.mulf %90, %93 : vector<1x256xf32>
    %98 = arith.addf %96, %97 : vector<1x256xf32>
    %99 = math.tanh %98 : vector<1x256xf32>
    %100 = arith.mulf %91, %99 : vector<1x256xf32>
    %c0_55 = arith.constant 0 : index
    %c0_56 = arith.constant 0 : index
    %c0_57 = arith.constant 0 : index
    %101 = vector.load %arg8[%c0_55, %c0_56, %c0_57] : memref<1x1x256xf32, #tpu.memory_space<vmem>>, vector<1x1x256xf32>
    %102 = vector.shape_cast %101 : vector<1x1x256xf32> to vector<1x256xf32>
    %103 = vector.shape_cast %98 : vector<1x256xf32> to vector<1x1x256xf32>
    tpu.vector_store %arg8[%c0_55, %c0_56, %c0_57], %103 {strides = array<i32>} : memref<1x1x256xf32, #tpu.memory_space<vmem>>, vector<1x1x256xf32>,
    %c0_58 = arith.constant 0 : index
    %c0_59 = arith.constant 0 : index
    %c0_60 = arith.constant 0 : index
    %104 = vector.load %arg7[%c0_58, %c0_59, %c0_60] : memref<1x1x256xf32, #tpu.memory_space<vmem>>, vector<1x1x256xf32>
    %105 = vector.shape_cast %104 : vector<1x1x256xf32> to vector<1x256xf32>
    %106 = vector.shape_cast %100 : vector<1x256xf32> to vector<1x1x256xf32>
    tpu.vector_store %arg7[%c0_58, %c0_59, %c0_60], %106 {strides = array<i32>} : memref<1x1x256xf32, #tpu.memory_space<vmem>>, vector<1x1x256xf32>,
    return
  }
  func.func @transform_0(%arg0: i32) -> (i32, i32, i32) {
    %c0_i32 = arith.constant 0 : i32
    %c0_i32_0 = arith.constant 0 : i32
    %c0_i32_1 = arith.constant 0 : i32
    return %arg0, %c0_i32, %c0_i32_0 : i32, i32, i32
  }
  func.func @transform_1(%arg0: i32) -> (i32, i32, i32) {
    %c0_i32 = arith.constant 0 : i32
    %c0_i32_0 = arith.constant 0 : i32
    %c0_i32_1 = arith.constant 0 : i32
    return %arg0, %c0_i32, %c0_i32_0 : i32, i32, i32
  }
  func.func @transform_2(%arg0: i32) -> (i32, i32, i32) {
    %c0_i32 = arith.constant 0 : i32
    %c0_i32_0 = arith.constant 0 : i32
    %c0_i32_1 = arith.constant 0 : i32
    return %arg0, %c0_i32, %c0_i32_0 : i32, i32, i32
  }
  func.func @transform_3(%arg0: i32) -> (i32, i32) {
    %c0_i32 = arith.constant 0 : i32
    %c0_i32_0 = arith.constant 0 : i32
    %c0_i32_1 = arith.constant 0 : i32
    return %c0_i32, %c0_i32_0 : i32, i32
  }
  func.func @transform_4(%arg0: i32) -> (i32, i32) {
    %c0_i32 = arith.constant 0 : i32
    %c0_i32_0 = arith.constant 0 : i32
    %c0_i32_1 = arith.constant 0 : i32
    return %c0_i32, %c0_i32_0 : i32, i32
  }
  func.func @transform_5(%arg0: i32) -> (i32, i32) {
    %c0_i32 = arith.constant 0 : i32
    %c0_i32_0 = arith.constant 0 : i32
    %c0_i32_1 = arith.constant 0 : i32
    return %c0_i32, %c0_i32_0 : i32, i32
  }
  func.func @transform_6(%arg0: i32) -> (i32, i32, i32) {
    %c0_i32 = arith.constant 0 : i32
    %c0_i32_0 = arith.constant 0 : i32
    %c0_i32_1 = arith.constant 0 : i32
    return %arg0, %c0_i32, %c0_i32_0 : i32, i32, i32
  }
  func.func @transform_7(%arg0: i32) -> (i32, i32, i32) {
    %c0_i32 = arith.constant 0 : i32
    %c0_i32_0 = arith.constant 0 : i32
    %c0_i32_1 = arith.constant 0 : i32
    return %arg0, %c0_i32, %c0_i32_0 : i32, i32, i32
  }
}

</mosaic_0001>

<bundles_post_ra>
// kernel: conv_lstm_cell.1
= control target key start
LH: loop header
LB: loop body
LE: loop exit
PB: predicated region body
PF: predicated region fallthrough
CT: control target
= control target key end

     0   :  { %s1574_s24 = smov 0   ;;  %s2074_s0 = inlined_call_operand.vmem [shape: f32[2,21,256], index: 0, kind: input, shape index: {}]   ;;  %s2075_s1 = inlined_call_operand.vmem [shape: f32[2,1,256], index: 1, kind: input, shape index: {}]   ;;  %s2076_s2 = inlined_call_operand.vmem [shape: f32[2,1,256], index: 2, kind: input, shape index: {}]   ;;  %s2077_s3 = inlined_call_operand.vmem [shape: bf16[4,288], index: 3, kind: input, shape index: {}]   ;;  %s2078_s4 = inlined_call_operand.vmem [shape: f32[4,1], index: 4, kind: input, shape index: {}]   ;;  %s2079_s5 = inlined_call_operand.vmem [shape: f32[9,256], index: 5, kind: input, shape index: {}]   ;;  %s2080_s6 = inlined_call_operand.vmem [shape: f32[2,1,256], index: 6, kind: output, shape index: {0}]   ;;  %s2081_s7 = inlined_call_operand.vmem [shape: f32[2,1,256], index: 7, kind: output, shape index: {1}]  }
   0x1 LB: > { %s1452_s25 = sadd.s32 4294967295, %s1520_s24   ;;  %p1456_p0 = scmp.ge.s32.totalorder %s1520_s24, 1  ;;  %s1520_s24 = sphi %s1574_s24, %s18_s24  }
   0x2   : > { %p258_p1 = scmp.lt.s32.totalorder %s1520_s24, 3 }
   0x4   : > { %p259_p2 = pnand %p1456_p0, %p258_p1 }
   0x5   : > { %p1584_p3 = scmp.lt.s32.totalorder (!%p259_p2), %s1452_s25, 1  ;;  %s1523_s10 = smov (!%p259_p2), 1  }
   0x6   : > { %262 = sbr.rel (%p259_p2) target bundleno = 536 (0x218), region = 44  ;;  %s1524_s11 = smov (!%p259_p2), 127  }
   0x7   : > { %s1525_s12 = smov (!%p259_p2), 15   ;;  %s1526_s17 = smov (!%p259_p2), 16  }
   0x8   : > { %s1527_s18 = smov (!%p259_p2), 17   ;;  %s1528_s19 = smov (!%p259_p2), 111  }
   0x9   : > { %s1529_s20 = smov (!%p259_p2), 112   ;;  %s1530_s21 = smov (!%p259_p2), 113  }
   0xb   : > { %v414_v0 = vlaneseq  ;;  %v1522_v1 = vmov 0.0   ;;  %s2086_s25 = smov (!%p1584_p3, %s1452_s25), 1  ;;  %v1465_v3 = vld [vmem:[%s2079_s5 + $0x4] ss:$8 sm:$0x3]  ;;  %vm1165_vm9 = vcmask 261120  }
   0xc   : > { %327 = vst [vmem:[#allocation2 + $0x20] sm:$0xff] %v1522_v1  ;;  %328 = vst [vmem:[#allocation2 + $0x28] sm:$0xff] %v1522_v1  ;;  %s1475_s29 = smul.u32 48, %s2086_s25  ;;  %s1663_s13 = sshll.u32 %s2086_s25, 1  ;;  %v1531_v37 = vmov 1983009808  }
   0xd   : > { %333 = vst [vmem:[#allocation2 + $0x50] sm:$0xff] %v1522_v1  ;;  %334 = vst [vmem:[#allocation2 + $0x58] sm:$0xff] %v1522_v1  ;;  %v1595_v2 = vshrl.u32 %v414_v0, 7  ;;  %s309_s16 = scalar_lea.vmem %s2075_s1, %s1663_s13  ;;  %vm1680_vm0 = vcmp.lt.s32.totalorder %v414_v0, 256  ;;  %v1723_v27 = vand.u32 127, %v414_v0  ;;  %v1149_v38 = vunpack.c.l.s4 %v1531_v37  ;;  %s313_s23 = scalar_lea.vmem %s2076_s2, %s1663_s13 }
   0xe   : > { %339 = vst [vmem:[#allocation2 + $0x80] sm:$0xff] %v1522_v1  ;;  %340 = vst [vmem:[#allocation2 + $0x88] sm:$0xff] %v1522_v1  ;;  %s305_s9 = scalar_lea.vmem %s2074_s0, %s1475_s29  ;;  %v401_v22 = vld [vmem:[%s309_s16] sm:$0x3]  ;;  %s321_s27 = scalar_lea.vmem %s2081_s7, %s1663_s13 }
   0xf   : > { %345 = vst [vmem:[#allocation2 + $0xb0] sm:$0xff] %v1522_v1  ;;  %346 = vst [vmem:[#allocation2 + $0xb8] sm:$0xff] %v1522_v1  ;;  %v1602_v4 = vsub.s32 0, %v1595_v2  ;;  %v1608_v5 = vsub.s32 1, %v1595_v2  ;;  %v1611_v7 = vld [vmem:[%s305_s9 + $0x10] sm:$0xff]  ;;  %v1613_v8 = vld [vmem:[%s305_s9] sm:$0xff]  ;;  %v735_v23 = vmul.f32 %v1465_v3, %v401_v22  ;;  %v1150_v47 = vunpack.c.0.s8 %v1149_v38  ;;  %s317_s30 = scalar_lea.vmem %s2080_s6, %s1663_s13 }
  0x10   : > { %351 = vst [vmem:[#allocation2 + $0xe0] sm:$0xff] %v1522_v1  ;;  %352 = vst [vmem:[#allocation2 + $0xe8] sm:$0xff] %v1522_v1  ;;  %639 = vrot.lane.b32.xlu1 %v1611_v7, %s1523_s10  ;;  %739 = vrot.lane.b32.xlu0 %v1613_v8, %s1524_s11  ;;  %v1619_v9 = vld [vmem:[%s305_s9 + $0x20] sm:$0x1f]  ;;  %v1622_v11 = vld [vmem:[%s305_s9 + $0x8] sm:$0xff]  ;;  %vm751_vm1 = vcmp.lt.s32.totalorder %v1723_v27, 127 }
  0x11   : > { %357 = vst [vmem:[#allocation2 + $0x110] sm:$0xff] %v1522_v1  ;;  %358 = vst [vmem:[#allocation2 + $0x118] sm:$0xff] %v1522_v1  ;;  %v716_v6 = vrot.slane %v1465_v3, %v1602_v4  ;;  %v720_v10 = vrot.slane %v1465_v3, %v1608_v5  ;;  %v1624_v12 = vld [vmem:[%s305_s9 + $0x28] sm:$0x1f]  ;;  %v1626_v13 = vld [vmem:[%s305_s9 + $0x18] sm:$0xff]  ;;  %v431_v25 = vrot.slane %v401_v22, %v1608_v5  ;;  %vm649_vm2 = vcmp.lt.s32.totalorder %v1723_v27, 1 }
  0x12   : > { %363 = vst [vmem:[#allocation2 + $0x140] sm:$0xff] %v1522_v1  ;;  %364 = vst [vmem:[#allocation2 + $0x148] sm:$0xff] %v1522_v1  ;;  %v427_v26 = vrot.slane %v401_v22, %v1602_v4  ;;  %v1466_v28 = vld [vmem:[%s2079_s5 + $0x5] ss:$8 sm:$0x3]  ;;  %vm576_vm3 = vcmp.lt.s32.totalorder %v1723_v27, 15  ;;  %v1153_v55 = vsub.s32 %v1150_v47, %v1595_v2 }
  0x13   : > { %369 = vst [vmem:[#allocation2 + $0x170] sm:$0xff] %v1522_v1  ;;  %370 = vst [vmem:[#allocation2 + $0x178] sm:$0xff] %v1522_v1  ;;  %v727_v14 = vmul.f32 %v716_v6, %v1619_v9  ;;  %v728_v15 = vmul.f32 %v720_v10, %v1624_v12  ;;  %v1631_v16 = vmul.f32 %v720_v10, %v1622_v11  ;;  %v1464_v33 = vld [vmem:[%s2079_s5 + $0x3] ss:$8 sm:$0x3]  ;;  %vm503_vm4 = vcmp.lt.s32.totalorder %v1723_v27, 16 }
  0x14   : > { %375 = vst [vmem:[#allocation2 + $0x1a0] sm:$0xff] %v1522_v1  ;;  %376 = vst [vmem:[#allocation2 + $0x1a8] sm:$0xff] %v1522_v1  ;;  %v1634_v17 = vmul.f32 %v720_v10, %v1626_v13  ;;  %v1637_v18 = vmul.f32 %v716_v6, %v1613_v8  ;;  %v1640_v19 = vmul.f32 %v716_v6, %v1611_v7  ;;  %641 = vrot.lane.b32.xlu1 %v1619_v9, %s1523_s10  ;;  %v1463_v36 = vld [vmem:[%s2079_s5 + $0x2] ss:$8 sm:$0x3] }
  0x15   : > { %377 = vst [vmem:[#allocation2 + $0x1b0] sm:$0xff] %v1522_v1  ;;  %378 = vst [vmem:[#allocation2 + $0x1b8] sm:$0xff] %v1522_v1  ;;  %745 = vrot.lane.b32.xlu0 %v1622_v11, %s1524_s11  ;;  %v1730_v31 = vrot.slane %v1466_v28, %v1602_v4  ;;  %v1733_v32 = vrot.slane %v1466_v28, %v1608_v5  ;;  %v1747_v41 = vrot.slane %v1464_v33, %v1602_v4  ;;  %v1139_v54 = vld [vmem:[%s2077_s3] sm:$0x3f] }
  0x16   : > { %379 = vst [vmem:[#allocation2 + $0x1c0] sm:$0xff] %v1522_v1  ;;  %380 = vst [vmem:[#allocation2 + $0x1c8] sm:$0xff] %v1522_v1  ;;  %v1116_v20 = vpack.c.bf16 %v1634_v17, %v1631_v16  ;;  %v1115_v21 = vpack.c.bf16 %v1640_v19, %v1637_v18  ;;  %v1756_v46 = vrot.slane %v1464_v33, %v1608_v5  ;;  %v1462_v47 = vld [vmem:[%s2079_s5 + $0x1] ss:$8 sm:$0x3]  ;;  %vm416_vm5 = vcmp.lt.s32.totalorder %v1723_v27, 17 }
  0x17   : > { %381 = vst [vmem:[#allocation2 + $0x1d0] sm:$0xff] %v1522_v1  ;;  %382 = vst [vmem:[#allocation2 + $0x1d8] sm:$0xff] %v1522_v1  ;;  %v1760_v48 = vrot.slane %v1463_v36, %v1602_v4  ;;  %v1763_v51 = vrot.slane %v1463_v36, %v1608_v5  ;;  %v1147_v0 = vcombine.high %v1139_v54, %v1139_v54  ;;  %vm970_vm6 = vcmp.lt.s32.totalorder %v1723_v27, 111 }
  0x18   : > { %383 = vst [vmem:[#allocation2 + $0x1e0] sm:$0xff] %v1522_v1  ;;  %384 = vst [vmem:[#allocation2 + $0x1e8] sm:$0xff] %v1522_v1  ;;  %647 = vrot.lane.b32.xlu1 %v1624_v12, %s1523_s10  ;;  %vm897_vm7 = vcmp.lt.s32.totalorder %v1723_v27, 112  ;;  %vm824_vm8 = vcmp.lt.s32.totalorder %v1723_v27, 113 }
  0x19   : > { %385 = vst [vmem:[#allocation2 + $0x1f0] sm:$0xff] %v1522_v1  ;;  %386 = vst [vmem:[#allocation2 + $0x1f8] sm:$0xff] %v1522_v1  ;;  %645 = vrot.lane.b32.xlu0 %v1626_v13, %s1523_s10  ;;  %v1794_v10 = vrot.slane %v1147_v0, %v1153_v55 }
  0x1a   : > { %387 = vst [vmem:[#allocation2 + $0x200] sm:$0xff] %v1522_v1  ;;  %388 = vst [vmem:[#allocation2 + $0x208] sm:$0xff] %v1522_v1 }
  0x1b   : > { %389 = vst [vmem:[#allocation2 + $0x210] sm:$0xff] %v1522_v1  ;;  %390 = vst [vmem:[#allocation2 + $0x218] sm:$0xff] %v1522_v1 }
  0x1c   : > { %391 = vst [vmem:[#allocation2 + $0x220] sm:$0xff] %v1522_v1  ;;  %392 = vst [vmem:[#allocation2 + $0x228] sm:$0xff] %v1522_v1  ;;  %574 = vrot.lane.b32.xlu1 %v1624_v12, %s1525_s12 }
  0x1d   : > { %393 = vst [vmem:[#allocation2 + $0x230] sm:$0xff] %v1522_v1  ;;  %394 = vst [vmem:[#allocation2 + $0x238] sm:$0xff] %v1522_v1  ;;  %568 = vrot.lane.b32.xlu0 %v1619_v9, %s1525_s12  ;;  %v1785_v1 = vrot.slane %v1139_v54, %v1153_v55  ;;  %v440_v54 = vld [vmem:[%s2079_s5] ss:$8 sm:$0x3]  ;;  %v1832_v55 = vrot.slane %v1462_v47, %v1602_v4 }
  0x1e   : > { %733 = vst [vmem:[#allocation2 + $0xe0] sm:$0x1f] %v727_v14  ;;  %734 = vst [vmem:[#allocation2 + $0xe8] sm:$0x1f] %v728_v15  ;;  %v1140_v14 = vld [vmem:[%s2078_s4] sm:$0xf] }
  0x1f   : > { %737 = vst.msk [vmem:[#allocation2 + $0x1f0] ss:$8 sm:$0x3] %vm1680_vm0, %v735_v23 }
  0x20   : > { %643 = vrot.lane.b32.xlu1 %v1622_v11, %s1523_s10 }
  0x21   : > { %637 = vrot.lane.b32.xlu0 %v1613_v8, %s1523_s10 }
  0x24   : > { %566 = vrot.lane.b32.xlu1 %v1611_v7, %s1525_s12 }
  0x25   : > { %564 = vrot.lane.b32.xlu0 %v1613_v8, %s1525_s12  ;;  %v1060_v42 = vld [vmem:[#allocation2 + $0xe8] sm:$0xff]  ;;  %v1059_v43 = vld [vmem:[#allocation2 + $0xe0] sm:$0xff] }
  0x28   : > { %572 = vrot.lane.b32.xlu1 %v1626_v13, %s1525_s12 }
  0x29   : > { %570 = vrot.lane.b32.xlu0 %v1622_v11, %s1525_s12 }
  0x2c   : > { %495 = vrot.lane.b32.xlu1 %v1619_v9, %s1526_s17 }
  0x2d   : > { %493 = vrot.lane.b32.xlu0 %v1611_v7, %s1526_s17 }
  0x30   : > { %501 = vrot.lane.b32.xlu1 %v1624_v12, %s1526_s17 }
  0x31   : > { %499 = vrot.lane.b32.xlu0 %v1626_v13, %s1526_s17 }
  0x34   : > { %412 = vrot.lane.b32.xlu1 %v1624_v12, %s1527_s18 }
  0x35   : > { %406 = vrot.lane.b32.xlu0 %v1619_v9, %s1527_s18 }
  0x38   : > { %497 = vrot.lane.b32.xlu1 %v1622_v11, %s1526_s17 }
  0x39   : > { %491 = vrot.lane.b32.xlu0 %v1613_v8, %s1526_s17 }
  0x3c   : > { %658 = vrot.lane.b32.xlu1 %v431_v25, %s1523_s10 }
  0x3d   : > { %656 = vrot.lane.b32.xlu0 %v427_v26, %s1523_s10 }
  0x40   : > { %404 = vrot.lane.b32.xlu1 %v1611_v7, %s1527_s18 }
  0x41   : > { %402 = vrot.lane.b32.xlu0 %v1613_v8, %s1527_s18 }
  0x44   : > { %410 = vrot.lane.b32.xlu1 %v1626_v13, %s1527_s18 }
  0x45   : > { %408 = vrot.lane.b32.xlu0 %v1622_v11, %s1527_s18 }
  0x48   : > { %512 = vrot.lane.b32.xlu1 %v431_v25, %s1526_s17 }
  0x49   : > { %510 = vrot.lane.b32.xlu0 %v427_v26, %s1526_s17 }
  0x4c   : > { %585 = vrot.lane.b32.xlu1 %v431_v25, %s1525_s12 }
  0x4d   : > { %583 = vrot.lane.b32.xlu0 %v427_v26, %s1525_s12 }
  0x50   : > { %436 = vrot.lane.b32.xlu1 %v431_v25, %s1527_s18 }
  0x51   : > { %434 = vrot.lane.b32.xlu0 %v427_v26, %s1527_s18 }
  0x54   : > { %968 = vrot.lane.b32.xlu1 %v1624_v12, %s1528_s19 }
  0x55   : > { %962 = vrot.lane.b32.xlu0 %v1619_v9, %s1528_s19 }
  0x58   : > { %960 = vrot.lane.b32.xlu1 %v1611_v7, %s1528_s19 }
  0x59   : > { %958 = vrot.lane.b32.xlu0 %v1613_v8, %s1528_s19 }
  0x5c   : > { %966 = vrot.lane.b32.xlu1 %v1626_v13, %s1528_s19 }
  0x5d   : > { %964 = vrot.lane.b32.xlu0 %v1622_v11, %s1528_s19 }
  0x60   : > { %889 = vrot.lane.b32.xlu1 %v1619_v9, %s1529_s20 }
  0x61   : > { %887 = vrot.lane.b32.xlu0 %v1611_v7, %s1529_s20 }
  0x64   : > { %895 = vrot.lane.b32.xlu1 %v1624_v12, %s1529_s20 }
  0x65   : > { %893 = vrot.lane.b32.xlu0 %v1626_v13, %s1529_s20 }
  0x68   : > { %822 = vrot.lane.b32.xlu1 %v1624_v12, %s1530_s21 }
  0x69   : > { %816 = vrot.lane.b32.xlu0 %v1619_v9, %s1530_s21 }
  0x6c   : > { %891 = vrot.lane.b32.xlu1 %v1622_v11, %s1529_s20 }
  0x6d   : > { %885 = vrot.lane.b32.xlu0 %v1613_v8, %s1529_s20 }
  0x70   : > { %906 = vrot.lane.b32.xlu1 %v431_v25, %s1529_s20 }
  0x71   : > { %904 = vrot.lane.b32.xlu0 %v427_v26, %s1529_s20 }
  0x74   : > { %979 = vrot.lane.b32.xlu1 %v431_v25, %s1528_s19 }
  0x75   : > { %977 = vrot.lane.b32.xlu0 %v427_v26, %s1528_s19 }
  0x78   : > { %760 = vrot.lane.b32.xlu1 %v431_v25, %s1524_s11 }
  0x79   : > { %758 = vrot.lane.b32.xlu0 %v427_v26, %s1524_s11 }
  0x7c   : > { %814 = vrot.lane.b32.xlu1 %v1611_v7, %s1530_s21 }
  0x7d   : > { %812 = vrot.lane.b32.xlu0 %v1613_v8, %s1530_s21 }
  0x80   : > { %820 = vrot.lane.b32.xlu1 %v1626_v13, %s1530_s21 }
  0x81   : > { %818 = vrot.lane.b32.xlu0 %v1622_v11, %s1530_s21  ;;  %v1162_v11 = vcombine.high %v1785_v1, %v1785_v1 }
  0x82   : > { %v640_v29 = vpop.permute.xlu1 %639  ;;  %v740_v30 = vpop.permute.xlu0 %739 }
  0x83   : > { %1201 = vmatprep.mubr.bf16.mxu0 %v1162_v11 }
  0x84   : > { %833 = vrot.lane.b32.xlu1 %v431_v25, %s1530_s21 }
  0x85   : > { %831 = vrot.lane.b32.xlu0 %v427_v26, %s1530_s21 }
  0x86   : > { %v642_v34 = vpop.permute.xlu1 %641 }
  0x87   : > { %v746_v35 = vpop.permute.xlu0 %745 }
  0x88   : > { %v752_v39 = vsel %vm751_vm1, %v740_v30, %v746_v35  ;;  %v755_v40 = vsel %vm751_vm1, %v746_v35, %v740_v30  ;;  %743 = vrot.lane.b32.xlu1 %v1619_v9, %s1524_s11 }
  0x89   : > { %v777_v44 = vmul.f32 %v1730_v31, %v752_v39  ;;  %v778_v45 = vmul.f32 %v1733_v32, %v755_v40  ;;  %741 = vrot.lane.b32.xlu0 %v1611_v7, %s1524_s11  ;;  %v1532_v7 = vmov 0  }
  0x8a   : > { %v648_v49 = vpop.permute.xlu1 %647  ;;  %1242 = vmatprep.mubr.bf16.mxu1 %v1532_v7  ;;  %1496 = vset.pattern.permute.xlu0 %v1532_v7 }
  0x8b   : > { %v646_v50 = vpop.permute.xlu0 %645  ;;  %v1118_v52 = vpack.c.bf16 %v778_v45, %v1060_v42  ;;  %v1117_v53 = vpack.c.bf16 %v777_v44, %v1059_v43  ;;  %v652_v56 = vsel %vm649_vm2, %v642_v34, %v648_v49  ;;  %v655_v57 = vsel %vm649_vm2, %v648_v49, %v642_v34 }
  0x8c   : > { %v651_v58 = vsel %vm649_vm2, %v640_v29, %v646_v50  ;;  %v654_v59 = vsel %vm649_vm2, %v646_v50, %v640_v29  ;;  %v679_v60 = vmul.f32 %v1747_v41, %v655_v57  ;;  %v680_v61 = vmul.f32 %v1756_v46, %v652_v56  ;;  %749 = vrot.lane.b32.xlu1 %v1624_v12, %s1524_s11 }
  0x8d   : > { %v677_v62 = vmul.f32 %v1747_v41, %v654_v59  ;;  %v678_v63 = vmul.f32 %v1756_v46, %v651_v58  ;;  %747 = vrot.lane.b32.xlu0 %v1626_v13, %s1524_s11  ;;  %1169 = vmatprep.subr.bf16.mxu0 %v1118_v52  ;;  %v1835_v56 = vrot.slane %v1462_v47, %v1608_v5 }
  0x8e   : > { %685 = vst [vmem:[#allocation2 + $0xb0] sm:$0x1f] %v679_v60  ;;  %686 = vst [vmem:[#allocation2 + $0xb8] sm:$0x1f] %v680_v61  ;;  %v575_v3 = vpop.permute.xlu1 %574  ;;  %1170 = vmatpush1.bf16.msra.mxu0 %v1117_v53  ;;  %v1839_v59 = vrot.slane %v440_v54, %v1602_v4  ;;  %v1842_v60 = vrot.slane %v440_v54, %v1608_v5 }
  0x8f   : > { %v569_v6 = vpop.permute.xlu0 %568  ;;  %1171 = vmatprep.subr.bf16.mxu0 %v1116_v20 }
  0x90   : > { %v579_v8 = vsel %vm576_vm3, %v569_v6, %v575_v3  ;;  %v582_v9 = vsel %vm576_vm3, %v575_v3, %v569_v6 }
  0x91   : > { %v606_v12 = vmul.f32 %v1760_v48, %v582_v9  ;;  %v607_v13 = vmul.f32 %v1763_v51, %v579_v8  ;;  %1143 = vperm.xlu0 %1496, %v1140_v14   ;;  %v1533_v14 = vmov 1966171168  }
  0x92   : > { %v644_v15 = vpop.permute.xlu1 %643  ;;  %1172 = vmatpush1.bf16.msra.mxu0 %v1115_v21 }
  0x93   : > { %612 = vst [vmem:[#allocation2 + $0x80] sm:$0x1f] %v606_v12  ;;  %613 = vst [vmem:[#allocation2 + $0x88] sm:$0x1f] %v607_v13  ;;  %v638_v16 = vpop.permute.xlu0 %637 }
  0x94   : > { %v650_v17 = vsel %vm649_vm2, %v638_v16, %v644_v15  ;;  %v653_v20 = vsel %vm649_vm2, %v644_v15, %v638_v16  ;;  %v470_v15 = vunpack.c.l.s4 %v1533_v14 }
  0x95   : > { %v675_v22 = vmul.f32 %v1747_v41, %v653_v20  ;;  %v676_v23 = vmul.f32 %v1756_v46, %v650_v17  ;;  %v1054_v25 = vld [vmem:[#allocation2 + $0xb8] sm:$0xff]  ;;  %v1053_v26 = vld [vmem:[#allocation2 + $0xb0] sm:$0xff] }
  0x96   : > { %v567_v28 = vpop.permute.xlu1 %566  ;;  %v1114_v30 = vpack.c.bf16 %v1054_v25, %v678_v63  ;;  %v1113_v33 = vpack.c.bf16 %v1053_v26, %v677_v62  ;;  %v471_v26 = vunpack.c.0.s8 %v470_v15 }
  0x97   : > { %v565_v29 = vpop.permute.xlu0 %564 }
  0x98   : > { %1173 = vmatprep.subr.bf16.mxu0 %v1114_v30 }
  0x99   : > { %1174 = vmatpush1.bf16.msra.mxu0 %v1113_v33 }
  0x9a   : > { %v1048_v18 = vld [vmem:[#allocation2 + $0x88] sm:$0xff]  ;;  %v1047_v19 = vld [vmem:[#allocation2 + $0x80] sm:$0xff]  ;;  %v573_v21 = vpop.permute.xlu1 %572 }
  0x9b   : > { %v571_v34 = vpop.permute.xlu0 %570  ;;  %v1112_v35 = vpack.c.bf16 %v676_v23, %v1048_v18  ;;  %v1111_v36 = vpack.c.bf16 %v675_v22, %v1047_v19  ;;  %v578_v37 = vsel %vm576_vm3, %v567_v28, %v573_v21  ;;  %v581_v38 = vsel %vm576_vm3, %v573_v21, %v567_v28 }
  0x9c   : > { %v577_v39 = vsel %vm576_vm3, %v565_v29, %v571_v34  ;;  %v580_v40 = vsel %vm576_vm3, %v571_v34, %v565_v29  ;;  %v604_v42 = vmul.f32 %v1760_v48, %v581_v38  ;;  %v605_v43 = vmul.f32 %v1763_v51, %v578_v37 }
  0x9d   : > { %v602_v44 = vmul.f32 %v1760_v48, %v580_v40  ;;  %v603_v45 = vmul.f32 %v1763_v51, %v577_v39  ;;  %1175 = vmatprep.subr.bf16.mxu0 %v1112_v35  ;;  %v1873_v37 = vsub.s32 %v471_v26, %v1595_v2 }
  0x9e   : > { %1176 = vmatpush1.bf16.msra.mxu0 %v1111_v36  ;;  %v496_v49 = vpop.permute.xlu1 %495 }
  0x9f   : > { %v494_v50 = vpop.permute.xlu0 %493  ;;  %v1110_v52 = vpack.c.bf16 %v605_v43, %v603_v45  ;;  %v1109_v53 = vpack.c.bf16 %v604_v42, %v602_v44 }
  0xa1   : > { %1177 = vmatprep.subr.bf16.mxu0 %v1110_v52 }
  0xa2   : > { %1178 = vmatpush1.bf16.msra.mxu0 %v1109_v53  ;;  %v502_v57 = vpop.permute.xlu1 %501 }
  0xa3   : > { %v500_v58 = vpop.permute.xlu0 %499  ;;  %v506_v61 = vsel %vm503_vm4, %v496_v49, %v502_v57  ;;  %v509_v62 = vsel %vm503_vm4, %v502_v57, %v496_v49 }
  0xa4   : > { %v505_v63 = vsel %vm503_vm4, %v494_v50, %v500_v58  ;;  %v508_v0 = vsel %vm503_vm4, %v500_v58, %v494_v50  ;;  %v533_v3 = vmul.f32 %v1832_v55, %v509_v62  ;;  %v534_v6 = vmul.f32 %v1835_v56, %v506_v61 }
  0xa5   : > { %v531_v7 = vmul.f32 %v1832_v55, %v508_v0  ;;  %v532_v8 = vmul.f32 %v1835_v56, %v505_v63 }
  0xa6   : > { %539 = vst [vmem:[#allocation2 + $0x50] sm:$0x1f] %v533_v3  ;;  %540 = vst [vmem:[#allocation2 + $0x58] sm:$0x1f] %v534_v6  ;;  %v413_v9 = vpop.permute.xlu1 %412 }
  0xa7   : > { %v407_v11 = vpop.permute.xlu0 %406 }
  0xa8   : > { %v419_v12 = vsel %vm416_vm5, %v407_v11, %v413_v9  ;;  %v422_v13 = vsel %vm416_vm5, %v413_v9, %v407_v11 }
  0xa9   : > { %v456_v16 = vmul.f32 %v1839_v59, %v422_v13  ;;  %v457_v17 = vmul.f32 %v1842_v60, %v419_v12  ;;  %v1094_v13 = vld [vmem:[#allocation2 + $0x1f8] sm:$0xff] }
  0xaa   : > { %v498_v20 = vpop.permute.xlu1 %497 }
  0xab   : > { %462 = vst [vmem:[#allocation2 + $0x20] sm:$0x1f] %v456_v16  ;;  %463 = vst [vmem:[#allocation2 + $0x28] sm:$0x1f] %v457_v17  ;;  %v492_v22 = vpop.permute.xlu0 %491  ;;  %v1093_v17 = vld [vmem:[#allocation2 + $0x1f0] sm:$0xff] }
  0xac   : > { %v504_v23 = vsel %vm503_vm4, %v492_v22, %v498_v20  ;;  %v507_v25 = vsel %vm503_vm4, %v498_v20, %v492_v22 }
  0xad   : > { %v529_v28 = vmul.f32 %v1832_v55, %v507_v25  ;;  %v530_v29 = vmul.f32 %v1835_v56, %v504_v23  ;;  %v1042_v30 = vld [vmem:[#allocation2 + $0x58] sm:$0xff]  ;;  %v1041_v33 = vld [vmem:[#allocation2 + $0x50] sm:$0xff] }
  0xae   : > { %v659_v18 = vpop.permute.xlu1 %658  ;;  %v1108_v21 = vpack.c.bf16 %v1042_v30, %v532_v8  ;;  %v1107_v34 = vpack.c.bf16 %v1041_v33, %v531_v7 }
  0xaf   : > { %v657_v19 = vpop.permute.xlu0 %656 }
  0xb0   : > { %v660_v35 = vsel %vm649_vm2, %v657_v19, %v659_v18  ;;  %v661_v36 = vsel %vm649_vm2, %v659_v18, %v657_v19  ;;  %1179 = vmatprep.subr.bf16.mxu0 %v1108_v21 }
  0xb1   : > { %v687_v38 = vmul.f32 %v1747_v41, %v661_v36  ;;  %v688_v39 = vmul.f32 %v1756_v46, %v660_v35  ;;  %1180 = vmatpush1.bf16.msra.mxu0 %v1107_v34 }
  0xb2   : > { %v1036_v40 = vld [vmem:[#allocation2 + $0x28] sm:$0xff]  ;;  %v1035_v42 = vld [vmem:[#allocation2 + $0x20] sm:$0xff]  ;;  %v405_v44 = vpop.permute.xlu1 %404 }
  0xb3   : > { %v691_v43 = vcombine.low %v687_v38, %v688_v39  ;;  %v403_v45 = vpop.permute.xlu0 %402  ;;  %v1106_v47 = vpack.c.bf16 %v530_v29, %v1036_v40  ;;  %v1105_v49 = vpack.c.bf16 %v529_v28, %v1035_v42  ;;  %v1469_v28 = vld [vmem:[%s2079_s5 + $0x10] ss:$8 sm:$0x3] }
  0xb4   : > { %v1924_v39 = vrot.slane %v1469_v28, %v1608_v5 }
  0xb5   : > { %v698_v50 = vrot.slane %v691_v43, %v1873_v37  ;;  %1181 = vmatprep.subr.bf16.mxu0 %v1106_v47 }
  0xb6   : > { %1182 = vmatpush1.bf16.msra.mxu0 %v1105_v49  ;;  %v411_v52 = vpop.permute.xlu1 %410 }
  0xb7   : > { %v705_v2 = vrot.slane %v698_v50, %v1873_v37  ;;  %v409_v53 = vpop.permute.xlu0 %408  ;;  %v418_v41 = vsel %vm416_vm5, %v405_v44, %v411_v52  ;;  %v421_v46 = vsel %vm416_vm5, %v411_v52, %v405_v44 }
  0xb8   : > { %v417_v54 = vsel %vm416_vm5, %v403_v45, %v409_v53  ;;  %v420_v57 = vsel %vm416_vm5, %v409_v53, %v403_v45  ;;  %v454_v58 = vmul.f32 %v1839_v59, %v421_v46  ;;  %v455_v61 = vmul.f32 %v1842_v60, %v418_v41 }
  0xb9   : > { %708 = vst.msk [vmem:[#allocation2 + $0x1e0] ss:$8 sm:$0x3] %vm1680_vm0, %v705_v2  ;;  %v452_v62 = vmul.f32 %v1839_v59, %v420_v57  ;;  %v453_v63 = vmul.f32 %v1842_v60, %v417_v54 }
  0xba   : > { %v513_v0 = vpop.permute.xlu1 %512 }
  0xbb   : > { %v511_v3 = vpop.permute.xlu0 %510  ;;  %v1104_v6 = vpack.c.bf16 %v455_v61, %v453_v63  ;;  %v1103_v7 = vpack.c.bf16 %v454_v58, %v452_v62 }
  0xbc   : > { %v514_v8 = vsel %vm503_vm4, %v511_v3, %v513_v0  ;;  %v515_v9 = vsel %vm503_vm4, %v513_v0, %v511_v3 }
  0xbd   : > { %v541_v11 = vmul.f32 %v1832_v55, %v515_v9  ;;  %v542_v12 = vmul.f32 %v1835_v56, %v514_v8  ;;  %1183 = vmatprep.subr.bf16.mxu0 %v1104_v6 }
  0xbe   : > { %1184 = vmatpush1.bf16.msra.mxu0 %v1103_v7  ;;  %v586_v15 = vpop.permute.xlu1 %585 }
  0xbf   : > { %v545_v14 = vcombine.low %v541_v11, %v542_v12  ;;  %v584_v16 = vpop.permute.xlu0 %583  ;;  %v1468_v12 = vld [vmem:[%s2079_s5 + $0x7] ss:$8 sm:$0x3] }
  0xc0   : > { %v587_v20 = vsel %vm576_vm3, %v584_v16, %v586_v15  ;;  %v588_v22 = vsel %vm576_vm3, %v586_v15, %v584_v16  ;;  %v1092_v23 = vld [vmem:[#allocation2 + $0x1e8] sm:$0xff]  ;;  %v1091_v25 = vld [vmem:[#allocation2 + $0x1e0] sm:$0xff] }
  0xc1   : > { %v552_v26 = vrot.slane %v545_v14, %v1873_v37  ;;  %v614_v55 = vmul.f32 %v1760_v48, %v588_v22  ;;  %v615_v56 = vmul.f32 %v1763_v51, %v587_v20  ;;  %v1134_v29 = vpack.c.bf16 %v1094_v13, %v1092_v23  ;;  %v1467_v16 = vld [vmem:[%s2079_s5 + $0x6] ss:$8 sm:$0x3] }
  0xc2   : > { %v1133_v30 = vpack.c.bf16 %v1093_v17, %v1091_v25  ;;  %v437_v19 = vpop.permute.xlu1 %436  ;;  %v1916_v51 = vrot.slane %v1469_v28, %v1602_v4  ;;  %v916_v23 = vrot.slane %v1468_v12, %v1602_v4  ;;  %v920_v25 = vrot.slane %v1468_v12, %v1608_v5 }
  0xc3   : > { %v559_v33 = vrot.slane %v552_v26, %v1873_v37  ;;  %v618_v18 = vcombine.low %v614_v55, %v615_v56  ;;  %v435_v21 = vpop.permute.xlu0 %434  ;;  %1185 = vmatprep.subr.bf16.mxu0 %v1134_v29  ;;  %v1962_v29 = vrot.slane %v1467_v16, %v1602_v4 }
  0xc4   : > { %v438_v34 = vsel %vm416_vm5, %v435_v21, %v437_v19  ;;  %v439_v48 = vsel %vm416_vm5, %v437_v19, %v435_v21  ;;  %1186 = vmatpush2.bf16.msra.mxu0 %v1133_v30  ;;  %v1965_v30 = vrot.slane %v1467_v16, %v1608_v5 }
  0xc5   : > { %562 = vst.msk [vmem:[#allocation2 + $0x1c0] ss:$8 sm:$0x3] %vm1680_vm0, %v559_v33  ;;  %v625_v35 = vrot.slane %v618_v18, %v1873_v37  ;;  %v464_v36 = vmul.f32 %v1839_v59, %v439_v48  ;;  %v465_v38 = vmul.f32 %v1842_v60, %v438_v34 }
  0xc6   : > { %v969_v43 = vpop.permute.xlu1 %968 }
  0xc7   : > { %v632_v40 = vrot.slane %v625_v35, %v1873_v37  ;;  %v468_v42 = vcombine.low %v464_v36, %v465_v38  ;;  %v963_v44 = vpop.permute.xlu0 %962 }
  0xc8   : > { %v973_v45 = vsel %vm970_vm6, %v963_v44, %v969_v43  ;;  %v976_v47 = vsel %vm970_vm6, %v969_v43, %v963_v44 }
  0xc9   : > { %635 = vst.msk [vmem:[#allocation2 + $0x1d0] ss:$8 sm:$0x3] %vm1680_vm0, %v632_v40  ;;  %v475_v59 = vrot.slane %v468_v42, %v1873_v37  ;;  %v1000_v60 = vmul.f32 %v1916_v51, %v973_v45  ;;  %v1001_v49 = vmul.f32 %v1924_v39, %v976_v47 }
  0xca   : > { %v961_v2 = vpop.permute.xlu1 %960 }
  0xcb   : > { %v482_v50 = vrot.slane %v475_v59, %v1873_v37  ;;  %1006 = vst [vmem:[#allocation2 + $0x1a0] sm:$0x1f] %v1000_v60  ;;  %1007 = vst [vmem:[#allocation2 + $0x1a8] sm:$0x1f] %v1001_v49  ;;  %v959_v52 = vpop.permute.xlu0 %958 }
  0xcc   : > { %v1088_v7 = vld [vmem:[#allocation2 + $0x1c8] sm:$0xff]  ;;  %v1087_v8 = vld [vmem:[#allocation2 + $0x1c0] sm:$0xff] }
  0xcd   : > { %489 = vst.msk [vmem:[#allocation2 + $0x1b0] ss:$8 sm:$0x3] %vm1680_vm0, %v482_v50 }
  0xce   : > { %v967_v53 = vpop.permute.xlu1 %966 }
  0xcf   : > { %v965_v41 = vpop.permute.xlu0 %964  ;;  %v972_v46 = vsel %vm970_vm6, %v961_v2, %v967_v53  ;;  %v975_v54 = vsel %vm970_vm6, %v967_v53, %v961_v2 }
  0xd0   : > { %v971_v57 = vsel %vm970_vm6, %v959_v52, %v965_v41  ;;  %v974_v58 = vsel %vm970_vm6, %v965_v41, %v959_v52  ;;  %v1090_v61 = vld [vmem:[#allocation2 + $0x1d8] sm:$0xff]  ;;  %v1089_v62 = vld [vmem:[#allocation2 + $0x1d0] sm:$0xff]  ;;  %v998_v63 = vmul.f32 %v1916_v51, %v972_v46  ;;  %v999_v0 = vmul.f32 %v1924_v39, %v975_v54 }
  0xd1   : > { %v996_v3 = vmul.f32 %v1916_v51, %v971_v57  ;;  %v997_v6 = vmul.f32 %v1924_v39, %v974_v58  ;;  %v1132_v9 = vpack.c.bf16 %v1090_v61, %v1088_v7  ;;  %v1131_v11 = vpack.c.bf16 %v1089_v62, %v1087_v8 }
  0xd2   : > { %v890_v13 = vpop.permute.xlu1 %889  ;;  %v1084_v15 = vld [vmem:[#allocation2 + $0x1a8] sm:$0xff]  ;;  %v1083_v20 = vld [vmem:[#allocation2 + $0x1a0] sm:$0xff] }
  0xd3   : > { %v888_v14 = vpop.permute.xlu0 %887  ;;  %1187 = vmatprep.subr.bf16.mxu0 %v1132_v9  ;;  %v1128_v33 = vpack.c.bf16 %v999_v0, %v997_v6  ;;  %v1127_v43 = vpack.c.bf16 %v998_v63, %v996_v3 }
  0xd4   : > { %v1086_v17 = vld [vmem:[#allocation2 + $0x1b8] sm:$0xff]  ;;  %v1085_v22 = vld [vmem:[#allocation2 + $0x1b0] sm:$0xff]  ;;  %1188 = vmatpush2.bf16.msra.mxu0 %v1131_v11 }
  0xd5   : > { %v1130_v26 = vpack.c.bf16 %v1086_v17, %v1084_v15  ;;  %v1129_v55 = vpack.c.bf16 %v1085_v22, %v1083_v20 }
  0xd6   : > { %v896_v56 = vpop.permute.xlu1 %895 }
  0xd7   : > { %v894_v28 = vpop.permute.xlu0 %893  ;;  %1189 = vmatprep.subr.bf16.mxu0 %v1130_v26  ;;  %v900_v18 = vsel %vm897_vm7, %v890_v13, %v896_v56  ;;  %v903_v19 = vsel %vm897_vm7, %v896_v56, %v890_v13 }
  0xd8   : > { %v899_v21 = vsel %vm897_vm7, %v888_v14, %v894_v28  ;;  %v902_v34 = vsel %vm897_vm7, %v894_v28, %v888_v14  ;;  %v927_v48 = vmul.f32 %v916_v23, %v900_v18  ;;  %v928_v35 = vmul.f32 %v920_v25, %v903_v19  ;;  %1190 = vmatpush2.bf16.msra.mxu0 %v1129_v55 }
  0xd9   : > { %v925_v36 = vmul.f32 %v916_v23, %v899_v21  ;;  %v926_v38 = vmul.f32 %v920_v25, %v902_v34  ;;  %1191 = vmatprep.subr.bf16.mxu0 %v1128_v33 }
  0xda   : > { %933 = vst [vmem:[#allocation2 + $0x170] sm:$0x1f] %v927_v48  ;;  %934 = vst [vmem:[#allocation2 + $0x178] sm:$0x1f] %v928_v35  ;;  %v823_v40 = vpop.permute.xlu1 %822 }
  0xdb   : > { %v817_v42 = vpop.permute.xlu0 %816 }
  0xdc   : > { %v827_v44 = vsel %vm824_vm8, %v817_v42, %v823_v40  ;;  %v830_v45 = vsel %vm824_vm8, %v823_v40, %v817_v42  ;;  %1192 = vmatpush2.bf16.msra.mxu0 %v1127_v43 }
  0xdd   : > { %v854_v47 = vmul.f32 %v1962_v29, %v827_v44  ;;  %v855_v59 = vmul.f32 %v1965_v30, %v830_v45 }
  0xde   : > { %v892_v60 = vpop.permute.xlu1 %891 }
  0xdf   : > { %860 = vst [vmem:[#allocation2 + $0x140] sm:$0x1f] %v854_v47  ;;  %861 = vst [vmem:[#allocation2 + $0x148] sm:$0x1f] %v855_v59  ;;  %v886_v49 = vpop.permute.xlu0 %885 }
  0xe0   : > { %v898_v50 = vsel %vm897_vm7, %v886_v49, %v892_v60  ;;  %v901_v2 = vsel %vm897_vm7, %v892_v60, %v886_v49 }
  0xe1   : > { %v923_v52 = vmul.f32 %v916_v23, %v898_v50  ;;  %v924_v53 = vmul.f32 %v920_v25, %v901_v2  ;;  %v1078_v41 = vld [vmem:[#allocation2 + $0x178] sm:$0xff]  ;;  %v1077_v46 = vld [vmem:[#allocation2 + $0x170] sm:$0xff] }
  0xe2   : > { %v907_v54 = vpop.permute.xlu1 %906  ;;  %v1126_v58 = vpack.c.bf16 %v1078_v41, %v926_v38  ;;  %v1125_v61 = vpack.c.bf16 %v1077_v46, %v925_v36 }
  0xe3   : > { %v905_v57 = vpop.permute.xlu0 %904 }
  0xe4   : > { %v908_v62 = vsel %vm897_vm7, %v905_v57, %v907_v54  ;;  %v909_v63 = vsel %vm897_vm7, %v907_v54, %v905_v57  ;;  %1193 = vmatprep.subr.bf16.mxu0 %v1126_v58 }
  0xe5   : > { %v935_v0 = vmul.f32 %v916_v23, %v908_v62  ;;  %v936_v3 = vmul.f32 %v920_v25, %v909_v63  ;;  %1194 = vmatpush2.bf16.msra.mxu0 %v1125_v61 }
  0xe6   : > { %v1072_v6 = vld [vmem:[#allocation2 + $0x148] sm:$0xff]  ;;  %v1071_v7 = vld [vmem:[#allocation2 + $0x140] sm:$0xff]  ;;  %v980_v9 = vpop.permute.xlu1 %979 }
  0xe7   : > { %v939_v8 = vcombine.low %v935_v0, %v936_v3  ;;  %v978_v11 = vpop.permute.xlu0 %977  ;;  %v1124_v12 = vpack.c.bf16 %v924_v53, %v1072_v6  ;;  %v1123_v13 = vpack.c.bf16 %v923_v52, %v1071_v7 }
  0xe8   : > { %v981_v14 = vsel %vm970_vm6, %v978_v11, %v980_v9  ;;  %v982_v15 = vsel %vm970_vm6, %v980_v9, %v978_v11 }
  0xe9   : > { %v946_v16 = vrot.slane %v939_v8, %v1873_v37  ;;  %v1008_v17 = vmul.f32 %v1916_v51, %v981_v14  ;;  %v1009_v20 = vmul.f32 %v1924_v39, %v982_v15  ;;  %1195 = vmatprep.subr.bf16.mxu0 %v1124_v12 }
  0xea   : > { %1196 = vmatpush2.bf16.msra.mxu0 %v1123_v13  ;;  %v761_v25 = vpop.permute.xlu1 %760 }
  0xeb   : > { %v953_v22 = vrot.slane %v946_v16, %v1873_v37  ;;  %v1012_v23 = vcombine.low %v1008_v17, %v1009_v20  ;;  %v759_v26 = vpop.permute.xlu0 %758 }
  0xec   : > { %v762_v55 = vsel %vm751_vm1, %v759_v26, %v761_v25  ;;  %v763_v56 = vsel %vm751_vm1, %v761_v25, %v759_v26 }
  0xed   : > { %956 = vst.msk [vmem:[#allocation2 + $0x220] ss:$8 sm:$0x3] %vm1680_vm0, %v953_v22  ;;  %v1019_v51 = vrot.slane %v1012_v23, %v1873_v37  ;;  %v789_v39 = vmul.f32 %v1730_v31, %v762_v55  ;;  %v790_v28 = vmul.f32 %v1733_v32, %v763_v56 }
  0xee   : > { %v815_v19 = vpop.permute.xlu1 %814 }
  0xef   : > { %v1026_v33 = vrot.slane %v1019_v51, %v1873_v37  ;;  %v793_v18 = vcombine.low %v789_v39, %v790_v28  ;;  %v813_v21 = vpop.permute.xlu0 %812 }
  0xf1   : > { %1029 = vst.msk [vmem:[#allocation2 + $0x230] ss:$8 sm:$0x3] %vm1680_vm0, %v1026_v33  ;;  %v800_v34 = vrot.slane %v793_v18, %v1873_v37 }
  0xf2   : > { %v821_v35 = vpop.permute.xlu1 %820 }
  0xf3   : > { %v807_v48 = vrot.slane %v800_v34, %v1873_v37  ;;  %v819_v36 = vpop.permute.xlu0 %818  ;;  %v826_v38 = vsel %vm824_vm8, %v815_v19, %v821_v35  ;;  %v829_v40 = vsel %vm824_vm8, %v821_v35, %v815_v19 }
  0xf4   : > { %v825_v42 = vsel %vm824_vm8, %v813_v21, %v819_v36  ;;  %v828_v43 = vsel %vm824_vm8, %v819_v36, %v813_v21  ;;  %v852_v44 = vmul.f32 %v1962_v29, %v826_v38  ;;  %v853_v45 = vmul.f32 %v1965_v30, %v829_v40  ;;  %v1100_v50 = vld [vmem:[#allocation2 + $0x228] sm:$0xff]  ;;  %v1099_v54 = vld [vmem:[#allocation2 + $0x220] sm:$0xff] }
  0xf5   : > { %810 = vst.msk [vmem:[#allocation2 + $0x200] ss:$8 sm:$0x3] %vm1680_vm0, %v807_v48  ;;  %v850_v47 = vmul.f32 %v1962_v29, %v825_v42  ;;  %v851_v59 = vmul.f32 %v1965_v30, %v828_v43 }
  0xf6   : > { %v834_v60 = vpop.permute.xlu1 %833 }
  0xf7   : > { %v832_v49 = vpop.permute.xlu0 %831  ;;  %v1122_v2 = vpack.c.bf16 %v853_v45, %v851_v59  ;;  %v1121_v52 = vpack.c.bf16 %v852_v44, %v850_v47  ;;  %v1265_v59 = vld [vmem:[%s313_s23] sm:$0x3] }
  0xf8   : > { %v835_v53 = vsel %vm824_vm8, %v832_v49, %v834_v60  ;;  %v836_v41 = vsel %vm824_vm8, %v834_v60, %v832_v49  ;;  %v1102_v46 = vld [vmem:[#allocation2 + $0x238] sm:$0xff]  ;;  %v1101_v57 = vld [vmem:[#allocation2 + $0x230] sm:$0xff]  ;;  %v1270_v49 = vrot.slane %v1265_v59, %v1602_v4 }
  0xf9   : > { %v862_v58 = vmul.f32 %v1962_v29, %v835_v53  ;;  %v863_v61 = vmul.f32 %v1965_v30, %v836_v41  ;;  %v1138_v62 = vpack.c.bf16 %v1102_v46, %v1100_v50  ;;  %v1137_v63 = vpack.c.bf16 %v1101_v57, %v1099_v54  ;;  %1197 = vmatprep.subr.bf16.mxu0 %v1122_v2 }
  0xfa   : > { %1198 = vmatpush2.bf16.msra.mxu0 %v1121_v52  ;;  %v744_v3 = vpop.permute.xlu1 %743  ;;  %v1274_v53 = vrot.slane %v1265_v59, %v1608_v5 }
  0xfb   : > { %v866_v0 = vcombine.low %v862_v58, %v863_v61  ;;  %1222 = vmatprep.subr.bf16.mxu1 %v1138_v62  ;;  %v742_v6 = vpop.permute.xlu0 %741 }
  0xfc   : > { %1223 = vmatpush1.bf16.msra.mxu1 %v1137_v63  ;;  %v1096_v20 = vld [vmem:[#allocation2 + $0x208] sm:$0xff]  ;;  %v1095_v23 = vld [vmem:[#allocation2 + $0x200] sm:$0xff] }
  0xfd   : > { %v873_v7 = vrot.slane %v866_v0, %v1873_v37 }
  0xfe   : > { %v750_v9 = vpop.permute.xlu1 %749 }
  0xff   : > { %v880_v8 = vrot.slane %v873_v7, %v1873_v37  ;;  %v754_v11 = vsel %vm751_vm1, %v744_v3, %v750_v9  ;;  %v757_v29 = vsel %vm751_vm1, %v750_v9, %v744_v3  ;;  %v748_v30 = vpop.permute.xlu0 %747 }
 0x100   : > { %v781_v12 = vmul.f32 %v1730_v31, %v754_v11  ;;  %v782_v13 = vmul.f32 %v1733_v32, %v757_v29  ;;  %v753_v14 = vsel %vm751_vm1, %v742_v6, %v748_v30  ;;  %v756_v15 = vsel %vm751_vm1, %v748_v30, %v742_v6 }
 0x101   : > { %883 = vst.msk [vmem:[#allocation2 + $0x210] ss:$8 sm:$0x3] %vm1680_vm0, %v880_v8  ;;  %v779_v16 = vmul.f32 %v1730_v31, %v753_v14  ;;  %v780_v17 = vmul.f32 %v1733_v32, %v756_v15 }
 0x102   : > { %787 = vst [vmem:[#allocation2 + $0x110] sm:$0x1f] %v781_v12  ;;  %788 = vst [vmem:[#allocation2 + $0x118] sm:$0x1f] %v782_v13 }
 0x108   : > { %v1098_v22 = vld [vmem:[#allocation2 + $0x218] sm:$0xff]  ;;  %v1097_v25 = vld [vmem:[#allocation2 + $0x210] sm:$0xff] }
 0x109   : > { %v1136_v26 = vpack.c.bf16 %v1098_v22, %v1096_v20  ;;  %v1135_v55 = vpack.c.bf16 %v1097_v25, %v1095_v23  ;;  %v1066_v56 = vld [vmem:[#allocation2 + $0x118] sm:$0xff]  ;;  %v1065_v51 = vld [vmem:[#allocation2 + $0x110] sm:$0xff] }
 0x10a   : > { %v1120_v39 = vpack.c.bf16 %v1066_v56, %v780_v17  ;;  %v1119_v28 = vpack.c.bf16 %v1065_v51, %v779_v16 }
 0x10b   : > { %1224 = vmatprep.subr.bf16.mxu1 %v1136_v26 }
 0x10c   : > { %1225 = vmatpush1.bf16.msra.mxu1 %v1135_v55  ;;  %1199 = vmatprep.subr.bf16.mxu0 %v1120_v39  ;;  %v1144_v31 = vpop.permute.xlu0 %1143 }
 0x10d   : > { %1200 = vmatpush2.bf16.msra.mxu0 %v1119_v28 }
 0x10f   : > { %1470 = vmatmul.mubr.msk.bf16.vlgmr.msra.gmra.mxu1 %vm1165_vm9, %v1794_v10 }
 0x110   : > { %1202 = vmatmul.mubr.bf16.vlgmr.msra.gmra.mxu0 %v1785_v1 }
 0x1cf   : > { %v1244_v27 = vpop.f32.mrf.mxu1 }
 0x1d0   : > { %v1203_v33 = vpop.f32.mrf.mxu0 }
 0x1d1   : > { %v1246_v32 = vpop.f32.mrf.mxu1  ;;  %v1204_v18 = vadd.f32 %v1203_v33, %v1144_v31 }
 0x1d2   : > { %v1205_v19 = vpop.f32.mrf.mxu0 }
 0x1d3   : > { %v1248_v21 = vpop.f32.mrf.mxu1  ;;  %v1245_v34 = vadd.f32 %v1244_v27, %v1204_v18  ;;  %v1206_v48 = vadd.f32 %v1205_v19, %v1144_v31 }
 0x1d4   : > { %v1207_v35 = vpop.f32.mrf.mxu0 }
 0x1d5   : > { %v1249_v36 = vpop.f32.mrf.mxu1  ;;  %v1471_v38 = vmul.f32 -1.442695, %v1245_v34  ;;  %v1247_v40 = vadd.f32 %v1246_v32, %v1206_v48 }
 0x1d6   : > { %v1208_v42 = vpop.f32.mrf.mxu0 }
 0x1d7   : > { %1498 = vpow2.f32 %v1471_v38  ;;  %v1472_v43 = vmul.f32 -1.442695, %v1247_v40 }
 0x1d9   : > { %1500 = vpow2.f32 %v1472_v43 }
 0x1da   : > { %1502 = vtanh.f32 %v1245_v34 }
 0x1db   : > { %1504 = vtanh.f32 %v1247_v40 }
 0x1e4   : > { %v1499_v1 = vpop.eup %1498 }
 0x1e5   : > { %v1257_v10 = vadd.f32 1.0, %v1499_v1 }
 0x1e6   : > { %v1501_v44 = vpop.eup %1500 }
 0x1e7   : > { %1506 = vrcp.f32 %v1257_v10  ;;  %v1258_v45 = vadd.f32 1.0, %v1501_v44  ;;  %v1503_v47 = vpop.eup %1502 }
 0x1e8   : > { %v1505_v60 = vpop.eup %1504  ;;  %v1281_v50 = vrot.slane %v1503_v47, 2 }
 0x1e9   : > { %1508 = vrcp.f32 %v1258_v45  ;;  %v1282_v41 = vrot.slane %v1505_v60, 2 }
 0x1f4   : > { %v1507_v2 = vpop.eup %1506 }
 0x1f5   : > { %v1285_v52 = vmul.f32 %v1507_v2, %v1281_v50  ;;  %v1277_v54 = vmul.f32 %v1507_v2, %v1270_v49 }
 0x1f6   : > { %v1509_v46 = vpop.eup %1508 }
 0x1f7   : > { %v1289_v57 = vrot.slane %v1285_v52, 1  ;;  %v1286_v58 = vmul.f32 %v1509_v46, %v1282_v41  ;;  %v1278_v62 = vmul.f32 %v1509_v46, %v1274_v53 }
 0x1f9   : > { %v1293_v61 = vadd.f32 %v1289_v57, %v1277_v54  ;;  %v1290_v63 = vrot.slane %v1286_v58, 1 }
 0x1fb   : > { %1510 = vtanh.f32 %v1293_v61  ;;  %v1294_v0 = vadd.f32 %v1290_v63, %v1278_v62 }
 0x1fd   : > { %1512 = vtanh.f32 %v1294_v0  ;;  %v1307_v3 = vcombine.low %v1293_v61, %v1294_v0 }
 0x1ff   : > { %v1314_v4 = vrot.slane %v1307_v3, %v1873_v37 }
 0x201   : > { %v1321_v5 = vrot.slane %v1314_v4, %v1873_v37 }
 0x203   : > { %1323 = vst.msk [vmem:[%s321_s27] sm:$0x3] %vm1680_vm0, %v1321_v5 }
 0x208   : > { %v1511_v6 = vpop.eup %1510 }
 0x209   : > { %v1299_v7 = vrot.slane %v1511_v6, 6 }
 0x20a   : > { %v1513_v8 = vpop.eup %1512 }
 0x20b   : > { %v1300_v9 = vrot.slane %v1513_v8, 6  ;;  %v1303_v11 = vmul.f32 %v1507_v2, %v1299_v7 }
 0x20d   : > { %v1304_v29 = vmul.f32 %v1509_v46, %v1300_v9 }
 0x20f   : > { %v1326_v30 = vcombine.low %v1303_v11, %v1304_v29 }
 0x211   : > { %v1333_v12 = vrot.slane %v1326_v30, %v1873_v37 }
 0x213   : > { %v1340_v13 = vrot.slane %v1333_v12, %v1873_v37 }
 0x215   : > { %v1341_v14 = vcombine.high %v1340_v13, %v1340_v13 }
 0x217   : > { %1343 = vst.msk [vmem:[%s317_s30] sm:$0x3] %vm1680_vm0, %v1341_v14 }
 0x218 PF: > { %s18_s24 = sadd.s32 1, %s1520_s24  }
 0x219   : > { %p15_p4 = scmp.ge.s32.totalorder %s18_s24, 4  }
 0x21b   :  { %17 = sbr.rel (!%p15_p4) target bundleno = 1 (0x1), region = 109 }

</bundles_post_ra>
